<compile_context>
chip_gen: v5e
topology: v5e:2x2
jax: 0.10.0
libtpu: 0.0.40
codegen_flags: <defaults>
</compile_context>

<pallas_src>
import functools

import jax
import jax.numpy as jnp
from jax import lax
from jax.experimental import pallas as pl
from jax.experimental.pallas import tpu as pltpu

BN_EPS = 1e-5


def _round_up(x, m):
    return (x + m - 1) // m * m


# ---------------- Pallas kernels ----------------

def _stats_kernel(patches_ref, w_ref, sum_ref, sq_ref):
    """Phase 1: conv tile on MXU, accumulate per-channel sum / sumsq."""
    @pl.when(pl.program_id(0) == 0)
    def _():
        sum_ref[...] = jnp.zeros_like(sum_ref)
        sq_ref[...] = jnp.zeros_like(sq_ref)

    conv = jnp.dot(patches_ref[...], w_ref[...],
                   preferred_element_type=jnp.float32)        # [TM, Cout_pad] f32
    sum_ref[...] += jnp.sum(conv, axis=0, keepdims=True)       # sublane reduce (XLU)
    sq_ref[...] += jnp.sum(conv * conv, axis=0, keepdims=True)


def _apply_kernel(patches_ref, w_ref, scale_ref, shift_ref, out_ref):
    """Phase 2: recompute conv tile, normalize with precomputed scale/shift, ReLU."""
    conv = jnp.dot(patches_ref[...], w_ref[...],
                   preferred_element_type=jnp.float32)
    out_ref[...] = jnp.maximum(conv * scale_ref[...] + shift_ref[...], 0.0)


# ---------------- Wrapper ----------------

@functools.partial(jax.jit,
                   static_argnames=("stride", "padding", "tile_m", "mxu_dtype"))
def conv_bn_relu(x_nchw, weight_oihw, gamma, beta, *, stride=1, padding=0,
                 tile_m=256, mxu_dtype=jnp.bfloat16):
    """Forward pass of _ConvBNReLU. x_nchw: [N, Cin, H, W] float32, NCHW out."""
    N, Cin, H, W = x_nchw.shape
    Cout, _, KH, KW = weight_oihw.shape
    OH = (H + 2 * padding - KH) // stride + 1
    OW = (W + 2 * padding - KW) // stride + 1
    M = N * OH * OW
    K = KH * KW * Cin

    # ---- padded, lane/sublane-friendly sizes ----
    K_pad = _round_up(K, 128)
    Cout_pad = _round_up(Cout, 128)
    tile_m = max(8, _round_up(min(tile_m, _round_up(M, 8)), 8))
    M_pad = _round_up(M, tile_m)
    n_tiles = M_pad // tile_m

    # ---- glue: NHWC + im2col in plain JAX ----
    # TODO(synk): fold the (kh, kw) gather into the kernel (strided NHWC tiles
    # accumulated over KH*KW matmuls) to avoid materializing the KH*KW x im2col
    # matrix in HBM.
    x_nhwc = jnp.transpose(x_nchw, (0, 2, 3, 1)).astype(jnp.float32)
    if padding > 0:
        x_nhwc = jnp.pad(
            x_nhwc, ((0, 0), (padding, padding), (padding, padding), (0, 0)))
    patch_slices = []
    for kh in range(KH):
        for kw in range(KW):
            patch_slices.append(
                x_nhwc[:, kh:kh + OH * stride:stride,
                       kw:kw + OW * stride:stride, :])          # [N, OH, OW, Cin]
    patches = jnp.concatenate(patch_slices, axis=-1).reshape(M, K)

    # zero-pad rows -> M_pad, contraction -> K_pad; bf16 MXU operands
    patches_p = jnp.pad(patches, ((0, M_pad - M), (0, K_pad - K))).astype(mxu_dtype)

    # weight [Cout, Cin, KH, KW] -> [(kh,kw,cin), Cout] -> padded [K_pad, Cout_pad]
    w_flat = jnp.transpose(weight_oihw, (2, 3, 1, 0)).reshape(K, Cout)
    w_p = jnp.pad(w_flat.astype(jnp.float32),
                  ((0, K_pad - K), (0, Cout_pad - Cout))).astype(mxu_dtype)

    # BN affine params, padded channels: gamma -> 1, beta -> 0 (sliced off later)
    gamma_p = jnp.pad(gamma.astype(jnp.float32).reshape(-1),
                      (0, Cout_pad - Cout), constant_values=1.0).reshape(1, Cout_pad)
    beta_p = jnp.pad(beta.astype(jnp.float32).reshape(-1),
                     (0, Cout_pad - Cout)).reshape(1, Cout_pad)

    grid = (n_tiles,)
    vmem_limit = 32 * 1024 * 1024
    matmul_flops = 2 * M_pad * K_pad * Cout_pad
    operand_bytes = patches_p.size * 2 + w_p.size * 2

    # ---- phase 1: per-channel sum / sumsq over all rows ----
    ch_sum, ch_sq = pl.pallas_call(
        _stats_kernel,
        out_shape=(jax.ShapeDtypeStruct((1, Cout_pad), jnp.float32),
                   jax.ShapeDtypeStruct((1, Cout_pad), jnp.float32)),
        grid=grid,
        in_specs=[
            pl.BlockSpec((tile_m, K_pad), lambda i: (i, 0)),
            pl.BlockSpec((K_pad, Cout_pad), lambda i: (0, 0)),
        ],
        out_specs=(
            pl.BlockSpec((1, Cout_pad), lambda i: (0, 0)),   # resident accumulator
            pl.BlockSpec((1, Cout_pad), lambda i: (0, 0)),
        ),
        compiler_params=pltpu.CompilerParams(
            dimension_semantics=("arbitrary",),
            vmem_limit_bytes=vmem_limit),
        cost_estimate=pl.CostEstimate(
            flops=matmul_flops + 3 * M_pad * Cout_pad,
            transcendentals=0,
            bytes_accessed=operand_bytes + 2 * Cout_pad * 4),
    )(patches_p, w_p)

    # ---- tiny JAX step: fold batch stats into per-channel scale / shift ----
    # Padded (zero) rows contribute 0 to sum/sumsq, so divide by the true M.
    inv_m = jnp.float32(1.0 / M)
    mean = ch_sum * inv_m
    var = jnp.maximum(ch_sq * inv_m - mean * mean, 0.0)   # biased batch var, f32
    inv_std = lax.rsqrt(var + BN_EPS)
    scale = gamma_p * inv_std                              # [1, Cout_pad]
    shift = beta_p - mean * scale                          # [1, Cout_pad]

    # ---- phase 2: apply (conv * scale + shift, ReLU), lane-dense output ----
    out_p = pl.pallas_call(
        _apply_kernel,
        out_shape=jax.ShapeDtypeStruct((M_pad, Cout_pad), jnp.float32),
        grid=grid,
        in_specs=[
            pl.BlockSpec((tile_m, K_pad), lambda i: (i, 0)),
            pl.BlockSpec((K_pad, Cout_pad), lambda i: (0, 0)),
            pl.BlockSpec((1, Cout_pad), lambda i: (0, 0)),
            pl.BlockSpec((1, Cout_pad), lambda i: (0, 0)),
        ],
        out_specs=pl.BlockSpec((tile_m, Cout_pad), lambda i: (i, 0)),
        compiler_params=pltpu.CompilerParams(
            dimension_semantics=("parallel",),
            vmem_limit_bytes=vmem_limit),
        cost_estimate=pl.CostEstimate(
            flops=matmul_flops + 3 * M_pad * Cout_pad,
            transcendentals=0,
            bytes_accessed=operand_bytes + 2 * Cout_pad * 4
                           + M_pad * Cout_pad * 4),
    )(patches_p, w_p, scale, shift)

    # strip padding, back to NCHW like PyTorch
    out = out_p[:M, :Cout].reshape(N, OH, OW, Cout)
    return jnp.transpose(out, (0, 3, 1, 2)).astype(jnp.float32)


# ---------------- Reference (pure JAX) ----------------

def _reference(x_nchw, weight_oihw, gamma, beta, *, stride=1, padding=0):
    conv = lax.conv_general_dilated(
        x_nchw, weight_oihw, window_strides=(stride, stride),
        padding=[(padding, padding), (padding, padding)],
        dimension_numbers=("NCHW", "OIHW", "NCHW"),
        precision=lax.Precision.HIGHEST)
    mean = jnp.mean(conv, axis=(0, 2, 3), keepdims=True)
    var = jnp.mean((conv - mean) ** 2, axis=(0, 2, 3), keepdims=True)
    y = (conv - mean) * lax.rsqrt(var + BN_EPS)
    y = y * gamma.reshape(1, -1, 1, 1) + beta.reshape(1, -1, 1, 1)
    return jnp.maximum(y, 0.0)


if __name__ == "__main__":
    # _ConvBNReLU(in_channels=4, out_channels=8), kernel_size=3, stride=1, padding=0
    N, Cin, H, W = 2, 4, 16, 16
    Cout, KH, KW = 8, 3, 3
    stride, padding = 1, 0

    key = jax.random.PRNGKey(0)
    kx, kw_, kg, kb = jax.random.split(key, 4)
    x = jax.random.normal(kx, (N, Cin, H, W), dtype=jnp.float32)
    weight = 0.1 * jax.random.normal(kw_, (Cout, Cin, KH, KW), dtype=jnp.float32)
    gamma = 1.0 + 0.1 * jax.random.normal(kg, (Cout,), dtype=jnp.float32)
    beta = 0.1 * jax.random.normal(kb, (Cout,), dtype=jnp.float32)

    out = conv_bn_relu(x, weight, gamma, beta, stride=stride, padding=padding)
    out = jax.block_until_ready(out)

    OH, OW = H - KH + 1, W - KW + 1
    assert out.shape == (N, Cout, OH, OW)

    # Tight structural check: reference fed with the same bf16-quantized conv
    # operands the MXU sees (isolates kernel correctness from the deliberate
    # bf16 operand cast).
    ref_q = _reference(x.astype(jnp.bfloat16).astype(jnp.float32),
                       weight.astype(jnp.bfloat16).astype(jnp.float32),
                       gamma, beta, stride=stride, padding=padding)
    assert jnp.allclose(out, ref_q, atol=1e-3, rtol=1e-3), \
        "mismatch vs bf16-operand reference"

    # Loose check vs full-f32 reference: budget for bf16 MXU operand rounding.
    ref = _reference(x, weight, gamma, beta, stride=stride, padding=padding)
    assert jnp.allclose(out, ref, atol=5e-2, rtol=5e-2), \
        "mismatch vs f32 reference"

    print("KERNEL_OK")
</pallas_src>

<mosaic_0001>
module attributes {stable_mosaic.version = 11 : i64} {
  func.func @_stats_kernel(%arg0: i32, %arg1: memref<256x128xbf16, #tpu.memory_space<vmem>>, %arg2: memref<128x128xbf16, #tpu.memory_space<vmem>>, %arg3: memref<1x128xf32, #tpu.memory_space<vmem>>, %arg4: memref<1x128xf32, #tpu.memory_space<vmem>>) attributes {dimension_semantics = [#tpu.dimension_semantics<arbitrary>], iteration_bounds = array<i64: 2>, scalar_prefetch = 0 : i64, scratch_operands = 0 : i64, tpu.core_type = #tpu.core_type<tc>, window_params = [{transform_indices = @transform_0, window_bounds = array<i64: 256, 128>}, {pipeline_mode = #tpu.pipeline_mode<synchronous>, transform_indices = @transform_1, window_bounds = array<i64: 128, 128>}, {pipeline_mode = #tpu.pipeline_mode<synchronous>, transform_indices = @transform_2, window_bounds = array<i64: 1, 128>}, {pipeline_mode = #tpu.pipeline_mode<synchronous>, transform_indices = @transform_3, window_bounds = array<i64: 1, 128>}]} {
    %c0_i32 = arith.constant 0 : i32
    %0 = arith.cmpi eq, %arg0, %c0_i32 : i32
    %1 = arith.extui %0 : i1 to i32
    %c0_i32_0 = arith.constant 0 : i32
    %2 = arith.cmpi ne, %1, %c0_i32_0 : i32
    scf.if %2 {
      %cst_14 = arith.constant 0.000000e+00 : f32
      %17 = vector.broadcast %cst_14 : f32 to vector<1x128xf32>
      %c0_15 = arith.constant 0 : index
      %c0_16 = arith.constant 0 : index
      %18 = vector.load %arg3[%c0_15, %c0_16] : memref<1x128xf32, #tpu.memory_space<vmem>>, vector<1x128xf32>
      tpu.vector_store %arg3[%c0_15, %c0_16], %17 {strides = array<i32>} : memref<1x128xf32, #tpu.memory_space<vmem>>, vector<1x128xf32>,
      %cst_17 = arith.constant 0.000000e+00 : f32
      %19 = vector.broadcast %cst_17 : f32 to vector<1x128xf32>
      %c0_18 = arith.constant 0 : index
      %c0_19 = arith.constant 0 : index
      %20 = vector.load %arg4[%c0_18, %c0_19] : memref<1x128xf32, #tpu.memory_space<vmem>>, vector<1x128xf32>
      tpu.vector_store %arg4[%c0_18, %c0_19], %19 {strides = array<i32>} : memref<1x128xf32, #tpu.memory_space<vmem>>, vector<1x128xf32>,
    } else {
    }
    %c0 = arith.constant 0 : index
    %c0_1 = arith.constant 0 : index
    %3 = vector.load %arg1[%c0, %c0_1] : memref<256x128xbf16, #tpu.memory_space<vmem>>, vector<256x128xbf16>
    %c0_2 = arith.constant 0 : index
    %c0_3 = arith.constant 0 : index
    %4 = vector.load %arg2[%c0_2, %c0_3] : memref<128x128xbf16, #tpu.memory_space<vmem>>, vector<128x128xbf16>
    %cst = arith.constant dense<0.000000e+00> : vector<256x128xf32>
    %5 = tpu.matmul %3, %4, %cst {dimension_numbers = #tpu.dot_dimension_numbers<[1], [0], [0], [1], [0, 0, 1, 1], [], []>} : vector<256x128xbf16>, vector<128x128xbf16>, vector<256x128xf32> -> vector<256x128xf32>
    %c0_4 = arith.constant 0 : index
    %c0_5 = arith.constant 0 : index
    %6 = vector.load %arg3[%c0_4, %c0_5] : memref<1x128xf32, #tpu.memory_space<vmem>>, vector<1x128xf32>
    %cst_6 = arith.constant dense<0.000000e+00> : vector<128xf32>
    %7 = vector.multi_reduction <add>, %5, %cst_6 [0] : vector<256x128xf32> to vector<128xf32>
    %8 = vector.shape_cast %7 : vector<128xf32> to vector<1x128xf32>
    %9 = arith.addf %6, %8 : vector<1x128xf32>
    %c0_7 = arith.constant 0 : index
    %c0_8 = arith.constant 0 : index
    %10 = vector.load %arg3[%c0_7, %c0_8] : memref<1x128xf32, #tpu.memory_space<vmem>>, vector<1x128xf32>
    tpu.vector_store %arg3[%c0_7, %c0_8], %9 {strides = array<i32>} : memref<1x128xf32, #tpu.memory_space<vmem>>, vector<1x128xf32>,
    %c0_9 = arith.constant 0 : index
    %c0_10 = arith.constant 0 : index
    %11 = vector.load %arg4[%c0_9, %c0_10] : memref<1x128xf32, #tpu.memory_space<vmem>>, vector<1x128xf32>
    %12 = arith.mulf %5, %5 : vector<256x128xf32>
    %cst_11 = arith.constant dense<0.000000e+00> : vector<128xf32>
    %13 = vector.multi_reduction <add>, %12, %cst_11 [0] : vector<256x128xf32> to vector<128xf32>
    %14 = vector.shape_cast %13 : vector<128xf32> to vector<1x128xf32>
    %15 = arith.addf %11, %14 : vector<1x128xf32>
    %c0_12 = arith.constant 0 : index
    %c0_13 = arith.constant 0 : index
    %16 = vector.load %arg4[%c0_12, %c0_13] : memref<1x128xf32, #tpu.memory_space<vmem>>, vector<1x128xf32>
    tpu.vector_store %arg4[%c0_12, %c0_13], %15 {strides = array<i32>} : memref<1x128xf32, #tpu.memory_space<vmem>>, vector<1x128xf32>,
    return
  }
  func.func @transform_0(%arg0: i32) -> (i32, i32) {
    %c0_i32 = arith.constant 0 : i32
    %c0_i32_0 = arith.constant 0 : i32
    return %arg0, %c0_i32 : i32, i32
  }
  func.func @transform_1(%arg0: i32) -> (i32, i32) {
    %c0_i32 = arith.constant 0 : i32
    %c0_i32_0 = arith.constant 0 : i32
    %c0_i32_1 = arith.constant 0 : i32
    return %c0_i32, %c0_i32_0 : i32, i32
  }
  func.func @transform_2(%arg0: i32) -> (i32, i32) {
    %c0_i32 = arith.constant 0 : i32
    %c0_i32_0 = arith.constant 0 : i32
    %c0_i32_1 = arith.constant 0 : i32
    return %c0_i32, %c0_i32_0 : i32, i32
  }
  func.func @transform_3(%arg0: i32) -> (i32, i32) {
    %c0_i32 = arith.constant 0 : i32
    %c0_i32_0 = arith.constant 0 : i32
    %c0_i32_1 = arith.constant 0 : i32
    return %c0_i32, %c0_i32_0 : i32, i32
  }
}

module attributes {stable_mosaic.version = 11 : i64} {
  func.func @_apply_kernel(%arg0: i32, %arg1: memref<256x128xbf16, #tpu.memory_space<vmem>>, %arg2: memref<128x128xbf16, #tpu.memory_space<vmem>>, %arg3: memref<1x128xf32, #tpu.memory_space<vmem>>, %arg4: memref<1x128xf32, #tpu.memory_space<vmem>>, %arg5: memref<256x128xf32, #tpu.memory_space<vmem>>) attributes {dimension_semantics = [#tpu.dimension_semantics<parallel>], iteration_bounds = array<i64: 2>, scalar_prefetch = 0 : i64, scratch_operands = 0 : i64, tpu.core_type = #tpu.core_type<tc>, window_params = [{transform_indices = @transform_0, window_bounds = array<i64: 256, 128>}, {pipeline_mode = #tpu.pipeline_mode<synchronous>, transform_indices = @transform_1, window_bounds = array<i64: 128, 128>}, {pipeline_mode = #tpu.pipeline_mode<synchronous>, transform_indices = @transform_2, window_bounds = array<i64: 1, 128>}, {pipeline_mode = #tpu.pipeline_mode<synchronous>, transform_indices = @transform_3, window_bounds = array<i64: 1, 128>}, {transform_indices = @transform_4, window_bounds = array<i64: 256, 128>}]} {
    %c0 = arith.constant 0 : index
    %c0_0 = arith.constant 0 : index
    %0 = vector.load %arg1[%c0, %c0_0] : memref<256x128xbf16, #tpu.memory_space<vmem>>, vector<256x128xbf16>
    %c0_1 = arith.constant 0 : index
    %c0_2 = arith.constant 0 : index
    %1 = vector.load %arg2[%c0_1, %c0_2] : memref<128x128xbf16, #tpu.memory_space<vmem>>, vector<128x128xbf16>
    %cst = arith.constant dense<0.000000e+00> : vector<256x128xf32>
    %2 = tpu.matmul %0, %1, %cst {dimension_numbers = #tpu.dot_dimension_numbers<[1], [0], [0], [1], [0, 0, 1, 1], [], []>} : vector<256x128xbf16>, vector<128x128xbf16>, vector<256x128xf32> -> vector<256x128xf32>
    %c0_3 = arith.constant 0 : index
    %c0_4 = arith.constant 0 : index
    %3 = vector.load %arg3[%c0_3, %c0_4] : memref<1x128xf32, #tpu.memory_space<vmem>>, vector<1x128xf32>
    %4 = vector.broadcast %3 : vector<1x128xf32> to vector<256x128xf32>
    %5 = arith.mulf %2, %4 : vector<256x128xf32>
    %c0_5 = arith.constant 0 : index
    %c0_6 = arith.constant 0 : index
    %6 = vector.load %arg4[%c0_5, %c0_6] : memref<1x128xf32, #tpu.memory_space<vmem>>, vector<1x128xf32>
    %7 = vector.broadcast %6 : vector<1x128xf32> to vector<256x128xf32>
    %8 = arith.addf %5, %7 : vector<256x128xf32>
    %cst_7 = arith.constant 0.000000e+00 : f32
    %9 = vector.broadcast %cst_7 : f32 to vector<256x128xf32>
    %10 = arith.maximumf %8, %9 : vector<256x128xf32>
    %c0_8 = arith.constant 0 : index
    %c0_9 = arith.constant 0 : index
    %11 = vector.load %arg5[%c0_8, %c0_9] : memref<256x128xf32, #tpu.memory_space<vmem>>, vector<256x128xf32>
    tpu.vector_store %arg5[%c0_8, %c0_9], %10 {strides = array<i32>} : memref<256x128xf32, #tpu.memory_space<vmem>>, vector<256x128xf32>,
    return
  }
  func.func @transform_0(%arg0: i32) -> (i32, i32) {
    %c0_i32 = arith.constant 0 : i32
    %c0_i32_0 = arith.constant 0 : i32
    return %arg0, %c0_i32 : i32, i32
  }
  func.func @transform_1(%arg0: i32) -> (i32, i32) {
    %c0_i32 = arith.constant 0 : i32
    %c0_i32_0 = arith.constant 0 : i32
    %c0_i32_1 = arith.constant 0 : i32
    return %c0_i32, %c0_i32_0 : i32, i32
  }
  func.func @transform_2(%arg0: i32) -> (i32, i32) {
    %c0_i32 = arith.constant 0 : i32
    %c0_i32_0 = arith.constant 0 : i32
    %c0_i32_1 = arith.constant 0 : i32
    return %c0_i32, %c0_i32_0 : i32, i32
  }
  func.func @transform_3(%arg0: i32) -> (i32, i32) {
    %c0_i32 = arith.constant 0 : i32
    %c0_i32_0 = arith.constant 0 : i32
    %c0_i32_1 = arith.constant 0 : i32
    return %c0_i32, %c0_i32_0 : i32, i32
  }
  func.func @transform_4(%arg0: i32) -> (i32, i32) {
    %c0_i32 = arith.constant 0 : i32
    %c0_i32_0 = arith.constant 0 : i32
    return %arg0, %c0_i32 : i32, i32
  }
}

</mosaic_0001>

<bundles_post_ra>
// kernel: conv_bn_relu.3
= control target key start
LH: loop header
LB: loop body
LE: loop exit
PB: predicated region body
PF: predicated region fallthrough
CT: control target
= control target key end

     0   :  { %s872_s15 = smov 0   ;;  %s1043_s0 = inlined_call_operand.vmem [shape: bf16[512,128], index: 0, kind: input, shape index: {}]   ;;  %s1044_s1 = inlined_call_operand.vmem [shape: bf16[128,128], index: 1, kind: input, shape index: {}]   ;;  %s1045_s2 = inlined_call_operand.vmem [shape: f32[1,128], index: 2, kind: input, shape index: {}]   ;;  %s1046_s3 = inlined_call_operand.vmem [shape: f32[1,128], index: 3, kind: input, shape index: {}]   ;;  %s1047_s4 = inlined_call_operand.vmem [shape: f32[512,128], index: 4, kind: output, shape index: {}]  }
   0x1 LB: > { %s674_s16 = sadd.s32 4294967295, %s845_s15   ;;  %p678_p0 = scmp.ge.s32.totalorder %s845_s15, 1  ;;  %s845_s15 = sphi %s872_s15, %s14_s15  }
   0x2   : > { %p163_p1 = scmp.lt.s32.totalorder %s845_s15, 3 }
   0x4   : > { %p164_p2 = pnand %p678_p0, %p163_p1 }
   0x5   : > { %s679_s25 = sshll.u32 (!%p164_p2), %s674_s16, 5 }
   0x6   : > { %167 = sbr.rel (%p164_p2) target bundleno = 240 (0xf0), region = 36  ;;  %p190_p3 = scmp.lt.s32.totalorder (!%p164_p2), %s679_s25, 63 }
   0xb   : > { %v804_v0 = vld [vmem:[%s1044_s1 + $0x38] sm:$0xff]  ;;  %v803_v1 = vld [vmem:[%s1044_s1 + $0x30] sm:$0xff]  ;;  %v802_v2 = vld [vmem:[%s1044_s1 + $0x28] sm:$0xff]  ;;  %s1049_s25 = smov (!%p190_p3, %s679_s25), 63 }
   0xc   : > { %393 = vmatpush.bf16.msra.mxu0 %v804_v0  ;;  %805 = vmatpush.bf16.msra.mxu1 %v804_v0  ;;  %v801_v3 = vld [vmem:[%s1044_s1 + $0x20] sm:$0xff]  ;;  %v800_v4 = vld [vmem:[%s1044_s1 + $0x18] sm:$0xff]  ;;  %v799_v5 = vld [vmem:[%s1044_s1 + $0x10] sm:$0xff]  ;;  %s680_s6 = sshll.u32 %s1049_s25, 2  ;;  %s682_s17 = sshll.u32 %s1049_s25, 3 }
   0xd   : > { %806 = vmatpush.bf16.msra.mxu2 %v804_v0  ;;  %807 = vmatpush.bf16.msra.mxu3 %v804_v0  ;;  %v798_v6 = vld [vmem:[%s1044_s1 + $0x8] sm:$0xff]  ;;  %v797_v7 = vld [vmem:[%s1044_s1] sm:$0xff]  ;;  %s910_s11 = scalar_lea.vmem %s1043_s0, %s680_s6  ;;  %s946_s20 = scalar_lea.vmem %s1047_s4, %s682_s17 }
   0xe   : > { %v781_v8 = vld [vmem:[%s910_s11] sm:$0xff]  ;;  %v782_v12 = vld [vmem:[%s910_s11 + $0x8] sm:$0xff]  ;;  %v783_v16 = vld [vmem:[%s910_s11 + $0x10] sm:$0xff] }
   0xf   : > { %v785_v9 = vld [vmem:[%s910_s11 + $0x20] sm:$0xff]  ;;  %v786_v13 = vld [vmem:[%s910_s11 + $0x28] sm:$0xff]  ;;  %v787_v17 = vld [vmem:[%s910_s11 + $0x30] sm:$0xff] }
  0x10   : > { %394 = vmatpush.bf16.msra.mxu0 %v803_v1  ;;  %808 = vmatpush.bf16.msra.mxu1 %v803_v1  ;;  %v789_v10 = vld [vmem:[%s910_s11 + $0x40] sm:$0xff]  ;;  %v790_v14 = vld [vmem:[%s910_s11 + $0x48] sm:$0xff]  ;;  %v791_v18 = vld [vmem:[%s910_s11 + $0x50] sm:$0xff] }
  0x11   : > { %809 = vmatpush.bf16.msra.mxu2 %v803_v1  ;;  %810 = vmatpush.bf16.msra.mxu3 %v803_v1  ;;  %v793_v11 = vld [vmem:[%s910_s11 + $0x60] sm:$0xff]  ;;  %v794_v15 = vld [vmem:[%s910_s11 + $0x68] sm:$0xff]  ;;  %v795_v19 = vld [vmem:[%s910_s11 + $0x70] sm:$0xff] }
  0x12   : > { %v784_v20 = vld [vmem:[%s910_s11 + $0x18] sm:$0xff]  ;;  %v931_v24 = vld [vmem:[%s1045_s2] ss:$0 sm:$0xff] }
  0x13   : > { %v788_v21 = vld [vmem:[%s910_s11 + $0x38] sm:$0xff]  ;;  %v936_v25 = vld [vmem:[%s1046_s3] ss:$0 sm:$0xff] }
  0x14   : > { %395 = vmatpush.bf16.msra.mxu0 %v802_v2  ;;  %811 = vmatpush.bf16.msra.mxu1 %v802_v2  ;;  %v792_v22 = vld [vmem:[%s910_s11 + $0x58] sm:$0xff] }
  0x15   : > { %812 = vmatpush.bf16.msra.mxu2 %v802_v2  ;;  %813 = vmatpush.bf16.msra.mxu3 %v802_v2  ;;  %v796_v23 = vld [vmem:[%s910_s11 + $0x78] sm:$0xff] }
  0x18   : > { %396 = vmatpush.bf16.msra.mxu0 %v801_v3  ;;  %814 = vmatpush.bf16.msra.mxu1 %v801_v3 }
  0x19   : > { %815 = vmatpush.bf16.msra.mxu2 %v801_v3  ;;  %816 = vmatpush.bf16.msra.mxu3 %v801_v3 }
  0x1c   : > { %397 = vmatpush.bf16.msra.mxu0 %v800_v4  ;;  %817 = vmatpush.bf16.msra.mxu1 %v800_v4 }
  0x1d   : > { %818 = vmatpush.bf16.msra.mxu2 %v800_v4  ;;  %819 = vmatpush.bf16.msra.mxu3 %v800_v4 }
  0x20   : > { %398 = vmatpush.bf16.msra.mxu0 %v799_v5  ;;  %820 = vmatpush.bf16.msra.mxu1 %v799_v5 }
  0x21   : > { %821 = vmatpush.bf16.msra.mxu2 %v799_v5  ;;  %822 = vmatpush.bf16.msra.mxu3 %v799_v5 }
  0x24   : > { %399 = vmatpush.bf16.msra.mxu0 %v798_v6  ;;  %823 = vmatpush.bf16.msra.mxu1 %v798_v6 }
  0x25   : > { %824 = vmatpush.bf16.msra.mxu2 %v798_v6  ;;  %825 = vmatpush.bf16.msra.mxu3 %v798_v6 }
  0x28   : > { %400 = vmatpush.bf16.msra.mxu0 %v797_v7  ;;  %826 = vmatpush.bf16.msra.mxu1 %v797_v7 }
  0x29   : > { %827 = vmatpush.bf16.msra.mxu2 %v797_v7  ;;  %828 = vmatpush.bf16.msra.mxu3 %v797_v7 }
  0x2b   : > { %401 = vmatmul.bf16.vlgmr.msra.gmra.mxu0 %v781_v8  ;;  %421 = vmatmul.bf16.vlgmr.msra.gmra.mxu1 %v785_v9 }
  0x2c   : > { %441 = vmatmul.bf16.vlgmr.msra.gmra.mxu2 %v789_v10  ;;  %461 = vmatmul.bf16.vlgmr.msra.gmra.mxu3 %v793_v11 }
  0x3b   : > { %406 = vmatmul.bf16.gmra.mxu0 %v782_v12  ;;  %426 = vmatmul.bf16.gmra.mxu1 %v786_v13 }
  0x3c   : > { %446 = vmatmul.bf16.gmra.mxu2 %v790_v14  ;;  %466 = vmatmul.bf16.gmra.mxu3 %v794_v15 }
  0x4b   : > { %411 = vmatmul.bf16.gmra.mxu0 %v783_v16  ;;  %431 = vmatmul.bf16.gmra.mxu1 %v787_v17 }
  0x4c   : > { %451 = vmatmul.bf16.gmra.mxu2 %v791_v18  ;;  %471 = vmatmul.bf16.gmra.mxu3 %v795_v19 }
  0x5b   : > { %416 = vmatmul.bf16.gmra.mxu0 %v784_v20  ;;  %436 = vmatmul.bf16.gmra.mxu1 %v788_v21 }
  0x5c   : > { %456 = vmatmul.bf16.gmra.mxu2 %v792_v22  ;;  %476 = vmatmul.bf16.gmra.mxu3 %v796_v23 }
  0xa8   : > { %v402_v26 = vpop.f32.mrf.mxu0  ;;  %v422_v27 = vpop.f32.mrf.mxu1 }
  0xa9   : > { %v486_v28 = vmul.f32 %v931_v24, %v402_v26  ;;  %v494_v29 = vmul.f32 %v931_v24, %v422_v27 }
  0xab   : > { %v522_v30 = vadd.f32 %v936_v25, %v486_v28  ;;  %v530_v31 = vadd.f32 %v936_v25, %v494_v29 }
  0xad   : > { %v554_v32 = vmax.f32 %v522_v30, 0.0  ;;  %v562_v33 = vmax.f32 %v530_v31, 0.0 }
  0xaf   : > { %586 = vst [vmem:[%s946_s20] sm:$0xff] %v554_v32  ;;  %v442_v34 = vpop.f32.mrf.mxu2  ;;  %v462_v35 = vpop.f32.mrf.mxu3 }
  0xb0   : > { %594 = vst [vmem:[%s946_s20 + $0x40] sm:$0xff] %v562_v33  ;;  %v502_v36 = vmul.f32 %v931_v24, %v442_v34  ;;  %v510_v37 = vmul.f32 %v931_v24, %v462_v35  ;;  %v404_v38 = vpop.f32.mrf.mxu0  ;;  %v424_v39 = vpop.f32.mrf.mxu1 }
  0xb1   : > { %v487_v40 = vmul.f32 %v931_v24, %v404_v38  ;;  %v495_v41 = vmul.f32 %v931_v24, %v424_v39 }
  0xb2   : > { %v538_v42 = vadd.f32 %v936_v25, %v502_v36  ;;  %v546_v43 = vadd.f32 %v936_v25, %v510_v37 }
  0xb3   : > { %v523_v44 = vadd.f32 %v936_v25, %v487_v40  ;;  %v531_v45 = vadd.f32 %v936_v25, %v495_v41 }
  0xb4   : > { %v570_v46 = vmax.f32 %v538_v42, 0.0  ;;  %v578_v47 = vmax.f32 %v546_v43, 0.0 }
  0xb5   : > { %v555_v48 = vmax.f32 %v523_v44, 0.0  ;;  %v563_v49 = vmax.f32 %v531_v45, 0.0 }
  0xb6   : > { %602 = vst [vmem:[%s946_s20 + $0x80] sm:$0xff] %v570_v46 }
  0xb7   : > { %610 = vst [vmem:[%s946_s20 + $0xc0] sm:$0xff] %v578_v47  ;;  %v444_v50 = vpop.f32.mrf.mxu2  ;;  %v464_v51 = vpop.f32.mrf.mxu3 }
  0xb8   : > { %587 = vst [vmem:[%s946_s20 + $0x8] sm:$0xff] %v555_v48  ;;  %v503_v52 = vmul.f32 %v931_v24, %v444_v50  ;;  %v511_v53 = vmul.f32 %v931_v24, %v464_v51  ;;  %v407_v54 = vpop.f32.mrf.mxu0  ;;  %v427_v55 = vpop.f32.mrf.mxu1 }
  0xb9   : > { %595 = vst [vmem:[%s946_s20 + $0x48] sm:$0xff] %v563_v49  ;;  %v488_v56 = vmul.f32 %v931_v24, %v407_v54  ;;  %v496_v57 = vmul.f32 %v931_v24, %v427_v55 }
  0xba   : > { %v539_v58 = vadd.f32 %v936_v25, %v503_v52  ;;  %v547_v59 = vadd.f32 %v936_v25, %v511_v53 }
  0xbb   : > { %v524_v60 = vadd.f32 %v936_v25, %v488_v56  ;;  %v532_v61 = vadd.f32 %v936_v25, %v496_v57 }
  0xbc   : > { %v571_v62 = vmax.f32 %v539_v58, 0.0  ;;  %v579_v63 = vmax.f32 %v547_v59, 0.0 }
  0xbd   : > { %v556_v0 = vmax.f32 %v524_v60, 0.0  ;;  %v564_v1 = vmax.f32 %v532_v61, 0.0 }
  0xbe   : > { %603 = vst [vmem:[%s946_s20 + $0x88] sm:$0xff] %v571_v62 }
  0xbf   : > { %611 = vst [vmem:[%s946_s20 + $0xc8] sm:$0xff] %v579_v63  ;;  %v447_v2 = vpop.f32.mrf.mxu2  ;;  %v467_v3 = vpop.f32.mrf.mxu3 }
  0xc0   : > { %588 = vst [vmem:[%s946_s20 + $0x10] sm:$0xff] %v556_v0  ;;  %v504_v4 = vmul.f32 %v931_v24, %v447_v2  ;;  %v512_v5 = vmul.f32 %v931_v24, %v467_v3  ;;  %v409_v6 = vpop.f32.mrf.mxu0  ;;  %v429_v7 = vpop.f32.mrf.mxu1 }
  0xc1   : > { %596 = vst [vmem:[%s946_s20 + $0x50] sm:$0xff] %v564_v1  ;;  %v489_v8 = vmul.f32 %v931_v24, %v409_v6  ;;  %v497_v9 = vmul.f32 %v931_v24, %v429_v7 }
  0xc2   : > { %v540_v10 = vadd.f32 %v936_v25, %v504_v4  ;;  %v548_v11 = vadd.f32 %v936_v25, %v512_v5 }
  0xc3   : > { %v525_v12 = vadd.f32 %v936_v25, %v489_v8  ;;  %v533_v13 = vadd.f32 %v936_v25, %v497_v9 }
  0xc4   : > { %v572_v14 = vmax.f32 %v540_v10, 0.0  ;;  %v580_v15 = vmax.f32 %v548_v11, 0.0 }
  0xc5   : > { %v557_v16 = vmax.f32 %v525_v12, 0.0  ;;  %v565_v17 = vmax.f32 %v533_v13, 0.0 }
  0xc6   : > { %604 = vst [vmem:[%s946_s20 + $0x90] sm:$0xff] %v572_v14 }
  0xc7   : > { %612 = vst [vmem:[%s946_s20 + $0xd0] sm:$0xff] %v580_v15  ;;  %v449_v18 = vpop.f32.mrf.mxu2  ;;  %v469_v19 = vpop.f32.mrf.mxu3 }
  0xc8   : > { %589 = vst [vmem:[%s946_s20 + $0x18] sm:$0xff] %v557_v16  ;;  %v505_v20 = vmul.f32 %v931_v24, %v449_v18  ;;  %v513_v21 = vmul.f32 %v931_v24, %v469_v19  ;;  %v412_v22 = vpop.f32.mrf.mxu0  ;;  %v432_v23 = vpop.f32.mrf.mxu1 }
  0xc9   : > { %597 = vst [vmem:[%s946_s20 + $0x58] sm:$0xff] %v565_v17  ;;  %v490_v26 = vmul.f32 %v931_v24, %v412_v22  ;;  %v498_v27 = vmul.f32 %v931_v24, %v432_v23 }
  0xca   : > { %v541_v28 = vadd.f32 %v936_v25, %v505_v20  ;;  %v549_v29 = vadd.f32 %v936_v25, %v513_v21 }
  0xcb   : > { %v526_v30 = vadd.f32 %v936_v25, %v490_v26  ;;  %v534_v31 = vadd.f32 %v936_v25, %v498_v27 }
  0xcc   : > { %v573_v32 = vmax.f32 %v541_v28, 0.0  ;;  %v581_v33 = vmax.f32 %v549_v29, 0.0 }
  0xcd   : > { %v558_v34 = vmax.f32 %v526_v30, 0.0  ;;  %v566_v35 = vmax.f32 %v534_v31, 0.0 }
  0xce   : > { %605 = vst [vmem:[%s946_s20 + $0x98] sm:$0xff] %v573_v32 }
  0xcf   : > { %613 = vst [vmem:[%s946_s20 + $0xd8] sm:$0xff] %v581_v33  ;;  %v452_v36 = vpop.f32.mrf.mxu2  ;;  %v472_v37 = vpop.f32.mrf.mxu3 }
  0xd0   : > { %590 = vst [vmem:[%s946_s20 + $0x20] sm:$0xff] %v558_v34  ;;  %v506_v38 = vmul.f32 %v931_v24, %v452_v36  ;;  %v514_v39 = vmul.f32 %v931_v24, %v472_v37  ;;  %v414_v40 = vpop.f32.mrf.mxu0  ;;  %v434_v41 = vpop.f32.mrf.mxu1 }
  0xd1   : > { %598 = vst [vmem:[%s946_s20 + $0x60] sm:$0xff] %v566_v35  ;;  %v491_v42 = vmul.f32 %v931_v24, %v414_v40  ;;  %v499_v43 = vmul.f32 %v931_v24, %v434_v41 }
  0xd2   : > { %v542_v44 = vadd.f32 %v936_v25, %v506_v38  ;;  %v550_v45 = vadd.f32 %v936_v25, %v514_v39 }
  0xd3   : > { %v527_v46 = vadd.f32 %v936_v25, %v491_v42  ;;  %v535_v47 = vadd.f32 %v936_v25, %v499_v43 }
  0xd4   : > { %v574_v48 = vmax.f32 %v542_v44, 0.0  ;;  %v582_v49 = vmax.f32 %v550_v45, 0.0 }
  0xd5   : > { %v559_v50 = vmax.f32 %v527_v46, 0.0  ;;  %v567_v51 = vmax.f32 %v535_v47, 0.0 }
  0xd6   : > { %606 = vst [vmem:[%s946_s20 + $0xa0] sm:$0xff] %v574_v48 }
  0xd7   : > { %614 = vst [vmem:[%s946_s20 + $0xe0] sm:$0xff] %v582_v49  ;;  %v454_v52 = vpop.f32.mrf.mxu2  ;;  %v474_v53 = vpop.f32.mrf.mxu3 }
  0xd8   : > { %591 = vst [vmem:[%s946_s20 + $0x28] sm:$0xff] %v559_v50  ;;  %v507_v54 = vmul.f32 %v931_v24, %v454_v52  ;;  %v515_v55 = vmul.f32 %v931_v24, %v474_v53  ;;  %v417_v56 = vpop.f32.mrf.mxu0  ;;  %v437_v57 = vpop.f32.mrf.mxu1 }
  0xd9   : > { %599 = vst [vmem:[%s946_s20 + $0x68] sm:$0xff] %v567_v51  ;;  %v492_v58 = vmul.f32 %v931_v24, %v417_v56  ;;  %v500_v59 = vmul.f32 %v931_v24, %v437_v57 }
  0xda   : > { %v543_v60 = vadd.f32 %v936_v25, %v507_v54  ;;  %v551_v61 = vadd.f32 %v936_v25, %v515_v55 }
  0xdb   : > { %v528_v62 = vadd.f32 %v936_v25, %v492_v58  ;;  %v536_v63 = vadd.f32 %v936_v25, %v500_v59 }
  0xdc   : > { %v575_v0 = vmax.f32 %v543_v60, 0.0  ;;  %v583_v1 = vmax.f32 %v551_v61, 0.0 }
  0xdd   : > { %v560_v2 = vmax.f32 %v528_v62, 0.0  ;;  %v568_v3 = vmax.f32 %v536_v63, 0.0 }
  0xde   : > { %607 = vst [vmem:[%s946_s20 + $0xa8] sm:$0xff] %v575_v0 }
  0xdf   : > { %615 = vst [vmem:[%s946_s20 + $0xe8] sm:$0xff] %v583_v1  ;;  %v457_v4 = vpop.f32.mrf.mxu2  ;;  %v477_v5 = vpop.f32.mrf.mxu3 }
  0xe0   : > { %592 = vst [vmem:[%s946_s20 + $0x30] sm:$0xff] %v560_v2  ;;  %v508_v6 = vmul.f32 %v931_v24, %v457_v4  ;;  %v516_v7 = vmul.f32 %v931_v24, %v477_v5  ;;  %v419_v8 = vpop.f32.mrf.mxu0  ;;  %v439_v9 = vpop.f32.mrf.mxu1 }
  0xe1   : > { %600 = vst [vmem:[%s946_s20 + $0x70] sm:$0xff] %v568_v3  ;;  %v493_v10 = vmul.f32 %v931_v24, %v419_v8  ;;  %v501_v11 = vmul.f32 %v931_v24, %v439_v9 }
  0xe2   : > { %v544_v12 = vadd.f32 %v936_v25, %v508_v6  ;;  %v552_v13 = vadd.f32 %v936_v25, %v516_v7 }
  0xe3   : > { %v529_v14 = vadd.f32 %v936_v25, %v493_v10  ;;  %v537_v15 = vadd.f32 %v936_v25, %v501_v11 }
  0xe4   : > { %v576_v16 = vmax.f32 %v544_v12, 0.0  ;;  %v584_v17 = vmax.f32 %v552_v13, 0.0 }
  0xe5   : > { %v561_v18 = vmax.f32 %v529_v14, 0.0  ;;  %v569_v19 = vmax.f32 %v537_v15, 0.0 }
  0xe6   : > { %608 = vst [vmem:[%s946_s20 + $0xb0] sm:$0xff] %v576_v16 }
  0xe7   : > { %616 = vst [vmem:[%s946_s20 + $0xf0] sm:$0xff] %v584_v17  ;;  %v459_v20 = vpop.f32.mrf.mxu2  ;;  %v479_v21 = vpop.f32.mrf.mxu3 }
  0xe8   : > { %593 = vst [vmem:[%s946_s20 + $0x38] sm:$0xff] %v561_v18  ;;  %v509_v22 = vmul.f32 %v931_v24, %v459_v20  ;;  %v517_v23 = vmul.f32 %v931_v24, %v479_v21 }
  0xe9   : > { %601 = vst [vmem:[%s946_s20 + $0x78] sm:$0xff] %v569_v19 }
  0xea   : > { %v545_v26 = vadd.f32 %v936_v25, %v509_v22  ;;  %v553_v27 = vadd.f32 %v936_v25, %v517_v23 }
  0xec   : > { %v577_v28 = vmax.f32 %v545_v26, 0.0  ;;  %v585_v29 = vmax.f32 %v553_v27, 0.0 }
  0xee   : > { %609 = vst [vmem:[%s946_s20 + $0xb8] sm:$0xff] %v577_v28 }
  0xef   : > { %617 = vst [vmem:[%s946_s20 + $0xf8] sm:$0xff] %v585_v29 }
  0xf0 PF: > { %s14_s15 = sadd.s32 1, %s845_s15  }
  0xf1   : > { %p11_p4 = scmp.ge.s32.totalorder %s14_s15, 4  }
  0xf3   :  { %13 = sbr.rel (!%p11_p4) target bundleno = 1 (0x1), region = 66 }

// kernel: conv_bn_relu.2
= control target key start
LH: loop header
LB: loop body
LE: loop exit
PB: predicated region body
PF: predicated region fallthrough
CT: control target
= control target key end

     0   :  { %s780_s12 = smov 0   ;;  %s889_s0 = inlined_call_operand.vmem [shape: bf16[512,128], index: 0, kind: input, shape index: {}]   ;;  %s890_s1 = inlined_call_operand.vmem [shape: bf16[128,128], index: 1, kind: input, shape index: {}]   ;;  %s891_s2 = inlined_call_operand.vmem [shape: f32[1,128], index: 2, kind: output, shape index: {0}]   ;;  %s892_s3 = inlined_call_operand.vmem [shape: f32[1,128], index: 3, kind: output, shape index: {1}]  }
   0x1 LB: > { %s589_s13 = sadd.s32 4294967295, %s757_s12   ;;  %p592_p0 = scmp.ge.s32.totalorder %s757_s12, 1  ;;  %s757_s12 = sphi %s780_s12, %s14_s12  }
   0x2   : > { %p131_p1 = scmp.lt.s32.totalorder %s757_s12, 3 }
   0x4   : > { %p132_p2 = pnand %p592_p0, %p131_p1 }
   0x5   : > { %s593_s14 = sshll.u32 (!%p132_p2), %s589_s13, 5  ;;  %p595_p4 = scmp.ne.s32.totalorder (!%p132_p2), %s589_s13, 0 }
   0x6   : > { %135 = sbr.rel (%p132_p2) target bundleno = 300 (0x12c), region = 28  ;;  %p151_p3 = scmp.lt.s32.totalorder (!%p132_p2), %s593_s14, 63 }
   0xb   : > { %s894_s14 = smov (!%p151_p3, %s593_s14), 63  ;;  %159 = sbr.rel (%p595_p4) target bundleno = 19 (0x13), region = 32 }
   0xc   : > { %s594_s15 = sshll.u32 %s894_s14, 2 }
   0xd   : > { %s791_s18 = scalar_lea.vmem %s889_s0, %s594_s15 }
  0x10   : > { %v759_v0 = vmov 0.0  }
  0x11   : > { %160 = vst [vmem:[%s891_s2] sm:$0x1] %v759_v0 }
  0x12   : > { %161 = vst [vmem:[%s892_s3] sm:$0x1] %v759_v0 }
  0x13 PF: > { %v717_v1 = vld [vmem:[%s890_s1 + $0x38] sm:$0xff]  ;;  %v716_v2 = vld [vmem:[%s890_s1 + $0x30] sm:$0xff]  ;;  %v715_v3 = vld [vmem:[%s890_s1 + $0x28] sm:$0xff] }
  0x14   : > { %354 = vmatpush.bf16.msra.mxu0 %v717_v1  ;;  %718 = vmatpush.bf16.msra.mxu1 %v717_v1  ;;  %v714_v4 = vld [vmem:[%s890_s1 + $0x20] sm:$0xff]  ;;  %v713_v5 = vld [vmem:[%s890_s1 + $0x18] sm:$0xff]  ;;  %v712_v6 = vld [vmem:[%s890_s1 + $0x10] sm:$0xff] }
  0x15   : > { %719 = vmatpush.bf16.msra.mxu2 %v717_v1  ;;  %720 = vmatpush.bf16.msra.mxu3 %v717_v1  ;;  %v711_v7 = vld [vmem:[%s890_s1 + $0x8] sm:$0xff]  ;;  %v710_v8 = vld [vmem:[%s890_s1] sm:$0xff]  ;;  %v696_v17 = vld [vmem:[%s791_s18 + $0x10] sm:$0xff] }
  0x16   : > { %v694_v9 = vld [vmem:[%s791_s18] sm:$0xff]  ;;  %v695_v13 = vld [vmem:[%s791_s18 + $0x8] sm:$0xff]  ;;  %v700_v18 = vld [vmem:[%s791_s18 + $0x30] sm:$0xff] }
  0x17   : > { %v698_v10 = vld [vmem:[%s791_s18 + $0x20] sm:$0xff]  ;;  %v699_v14 = vld [vmem:[%s791_s18 + $0x28] sm:$0xff]  ;;  %v704_v19 = vld [vmem:[%s791_s18 + $0x50] sm:$0xff] }
  0x18   : > { %355 = vmatpush.bf16.msra.mxu0 %v716_v2  ;;  %721 = vmatpush.bf16.msra.mxu1 %v716_v2  ;;  %v702_v11 = vld [vmem:[%s791_s18 + $0x40] sm:$0xff]  ;;  %v703_v15 = vld [vmem:[%s791_s18 + $0x48] sm:$0xff]  ;;  %v708_v20 = vld [vmem:[%s791_s18 + $0x70] sm:$0xff] }
  0x19   : > { %722 = vmatpush.bf16.msra.mxu2 %v716_v2  ;;  %723 = vmatpush.bf16.msra.mxu3 %v716_v2  ;;  %v706_v12 = vld [vmem:[%s791_s18 + $0x60] sm:$0xff]  ;;  %v707_v16 = vld [vmem:[%s791_s18 + $0x68] sm:$0xff]  ;;  %v697_v21 = vld [vmem:[%s791_s18 + $0x18] sm:$0xff] }
  0x1a   : > { %v701_v22 = vld [vmem:[%s791_s18 + $0x38] sm:$0xff] }
  0x1b   : > { %v705_v23 = vld [vmem:[%s791_s18 + $0x58] sm:$0xff] }
  0x1c   : > { %356 = vmatpush.bf16.msra.mxu0 %v715_v3  ;;  %724 = vmatpush.bf16.msra.mxu1 %v715_v3  ;;  %v709_v24 = vld [vmem:[%s791_s18 + $0x78] sm:$0xff] }
  0x1d   : > { %725 = vmatpush.bf16.msra.mxu2 %v715_v3  ;;  %726 = vmatpush.bf16.msra.mxu3 %v715_v3 }
  0x20   : > { %357 = vmatpush.bf16.msra.mxu0 %v714_v4  ;;  %727 = vmatpush.bf16.msra.mxu1 %v714_v4 }
  0x21   : > { %728 = vmatpush.bf16.msra.mxu2 %v714_v4  ;;  %729 = vmatpush.bf16.msra.mxu3 %v714_v4 }
  0x24   : > { %358 = vmatpush.bf16.msra.mxu0 %v713_v5  ;;  %730 = vmatpush.bf16.msra.mxu1 %v713_v5 }
  0x25   : > { %731 = vmatpush.bf16.msra.mxu2 %v713_v5  ;;  %732 = vmatpush.bf16.msra.mxu3 %v713_v5 }
  0x28   : > { %359 = vmatpush.bf16.msra.mxu0 %v712_v6  ;;  %733 = vmatpush.bf16.msra.mxu1 %v712_v6 }
  0x29   : > { %734 = vmatpush.bf16.msra.mxu2 %v712_v6  ;;  %735 = vmatpush.bf16.msra.mxu3 %v712_v6 }
  0x2c   : > { %360 = vmatpush.bf16.msra.mxu0 %v711_v7  ;;  %736 = vmatpush.bf16.msra.mxu1 %v711_v7 }
  0x2d   : > { %737 = vmatpush.bf16.msra.mxu2 %v711_v7  ;;  %738 = vmatpush.bf16.msra.mxu3 %v711_v7 }
  0x30   : > { %361 = vmatpush.bf16.msra.mxu0 %v710_v8  ;;  %739 = vmatpush.bf16.msra.mxu1 %v710_v8 }
  0x31   : > { %740 = vmatpush.bf16.msra.mxu2 %v710_v8  ;;  %741 = vmatpush.bf16.msra.mxu3 %v710_v8 }
  0x33   : > { %362 = vmatmul.bf16.vlgmr.msra.gmra.mxu0 %v694_v9  ;;  %382 = vmatmul.bf16.vlgmr.msra.gmra.mxu1 %v698_v10 }
  0x34   : > { %402 = vmatmul.bf16.vlgmr.msra.gmra.mxu2 %v702_v11  ;;  %422 = vmatmul.bf16.vlgmr.msra.gmra.mxu3 %v706_v12 }
  0x43   : > { %367 = vmatmul.bf16.gmra.mxu0 %v695_v13  ;;  %387 = vmatmul.bf16.gmra.mxu1 %v699_v14 }
  0x44   : > { %407 = vmatmul.bf16.gmra.mxu2 %v703_v15  ;;  %427 = vmatmul.bf16.gmra.mxu3 %v707_v16 }
  0x53   : > { %372 = vmatmul.bf16.gmra.mxu0 %v696_v17  ;;  %392 = vmatmul.bf16.gmra.mxu1 %v700_v18 }
  0x54   : > { %412 = vmatmul.bf16.gmra.mxu2 %v704_v19  ;;  %432 = vmatmul.bf16.gmra.mxu3 %v708_v20 }
  0x63   : > { %377 = vmatmul.bf16.gmra.mxu0 %v697_v21  ;;  %397 = vmatmul.bf16.gmra.mxu1 %v701_v22 }
  0x64   : > { %417 = vmatmul.bf16.gmra.mxu2 %v705_v23  ;;  %437 = vmatmul.bf16.gmra.mxu3 %v709_v24 }
  0xb0   : > { %v363_v25 = vpop.f32.mrf.mxu0  ;;  %v383_v26 = vpop.f32.mrf.mxu1 }
  0xb1   : > { %v484_v42 = vmul.f32 %v363_v25, %v363_v25  ;;  %v492_v4 = vmul.f32 %v383_v26, %v383_v26 }
  0xb7   : > { %v839_v30 = vpop.f32.mrf.mxu2  ;;  %v843_v36 = vpop.f32.mrf.mxu3 }
  0xb8   : > { %v365_v27 = vpop.f32.mrf.mxu0  ;;  %v385_v28 = vpop.f32.mrf.mxu1 }
  0xb9   : > { %v485_v41 = vmul.f32 %v365_v27, %v365_v27  ;;  %v444_v43 = vadd.f32 %v365_v27, %v363_v25  ;;  %v493_v8 = vmul.f32 %v385_v28, %v385_v28 }
  0xbb   : > { %v516_v46 = vadd.f32 %v485_v41, %v484_v42 }
  0xbf   : > { %v841_v33 = vpop.f32.mrf.mxu2  ;;  %v847_v40 = vpop.f32.mrf.mxu3 }
  0xc0   : > { %v368_v29 = vpop.f32.mrf.mxu0  ;;  %v388_v31 = vpop.f32.mrf.mxu1 }
  0xc1   : > { %v486_v44 = vmul.f32 %v368_v29, %v368_v29  ;;  %v445_v47 = vadd.f32 %v444_v43, %v368_v29  ;;  %v494_v12 = vmul.f32 %v388_v31, %v388_v31 }
  0xc3   : > { %v517_v50 = vadd.f32 %v516_v46, %v486_v44 }
  0xc7   : > { %v845_v37 = vpop.f32.mrf.mxu2  ;;  %v851_v57 = vpop.f32.mrf.mxu3 }
  0xc8   : > { %v370_v32 = vpop.f32.mrf.mxu0  ;;  %v390_v34 = vpop.f32.mrf.mxu1  ;;  %v502_v46 = vmul.f32 %v845_v37, %v845_v37 }
  0xc9   : > { %v487_v48 = vmul.f32 %v370_v32, %v370_v32  ;;  %v446_v51 = vadd.f32 %v445_v47, %v370_v32  ;;  %v495_v15 = vmul.f32 %v390_v34, %v390_v34 }
  0xcb   : > { %v518_v54 = vadd.f32 %v517_v50, %v487_v48 }
  0xcf   : > { %v849_v45 = vpop.f32.mrf.mxu2  ;;  %v430_v11 = vpop.f32.mrf.mxu3 }
  0xd0   : > { %v373_v35 = vpop.f32.mrf.mxu0  ;;  %v393_v39 = vpop.f32.mrf.mxu1 }
  0xd1   : > { %v488_v52 = vmul.f32 %v373_v35, %v373_v35  ;;  %v447_v55 = vadd.f32 %v446_v51, %v373_v35  ;;  %v496_v19 = vmul.f32 %v393_v39, %v393_v39 }
  0xd3   : > { %v519_v58 = vadd.f32 %v518_v54, %v488_v52 }
  0xd7   : > { %v413_v0 = vpop.f32.mrf.mxu2 }
  0xd8   : > { %v375_v38 = vpop.f32.mrf.mxu0  ;;  %v395_v53 = vpop.f32.mrf.mxu1  ;;  %v504_v52 = vmul.f32 %v413_v0, %v413_v0 }
  0xd9   : > { %v489_v56 = vmul.f32 %v375_v38, %v375_v38  ;;  %v448_v59 = vadd.f32 %v447_v55, %v375_v38  ;;  %v497_v22 = vmul.f32 %v395_v53, %v395_v53 }
  0xdb   : > { %v520_v61 = vadd.f32 %v519_v58, %v489_v56 }
  0xdf   : > { %v415_v18 = vpop.f32.mrf.mxu2 }
  0xe0   : > { %v378_v49 = vpop.f32.mrf.mxu0  ;;  %v398_v7 = vpop.f32.mrf.mxu1  ;;  %v505_v56 = vmul.f32 %v415_v18, %v415_v18 }
  0xe1   : > { %v490_v60 = vmul.f32 %v378_v49, %v378_v49  ;;  %v449_v62 = vadd.f32 %v448_v59, %v378_v49  ;;  %v498_v27 = vmul.f32 %v398_v7, %v398_v7  ;;  %v503_v49 = vmul.f32 %v849_v45, %v849_v45 }
  0xe3   : > { %v521_v1 = vadd.f32 %v520_v61, %v490_v60 }
  0xe7   : > { %v418_v42 = vpop.f32.mrf.mxu2 }
  0xe8   : > { %v380_v63 = vpop.f32.mrf.mxu0  ;;  %v400_v25 = vpop.f32.mrf.mxu1  ;;  %v506_v61 = vmul.f32 %v418_v42, %v418_v42 }
  0xe9   : > { %v450_v2 = vadd.f32 %v449_v62, %v380_v63  ;;  %v491_v3 = vmul.f32 %v380_v63, %v380_v63  ;;  %v499_v38 = vmul.f32 %v400_v25, %v400_v25 }
  0xeb   : > { %v451_v5 = vadd.f32 %v450_v2, %v383_v26  ;;  %v522_v6 = vadd.f32 %v521_v1, %v491_v3  ;;  %v508_v1 = vmul.f32 %v843_v36, %v843_v36 }
  0xed   : > { %v452_v9 = vadd.f32 %v451_v5, %v385_v28  ;;  %v523_v10 = vadd.f32 %v522_v6, %v492_v4  ;;  %v433_v28 = vpop.f32.mrf.mxu3  ;;  %v510_v6 = vmul.f32 %v851_v57, %v851_v57 }
  0xef   : > { %v453_v13 = vadd.f32 %v452_v9, %v388_v31  ;;  %v524_v14 = vadd.f32 %v523_v10, %v493_v8  ;;  %v500_v31 = vmul.f32 %v839_v30, %v839_v30  ;;  %v420_v58 = vpop.f32.mrf.mxu2  ;;  %v511_v9 = vmul.f32 %v430_v11, %v430_v11 }
  0xf0   : > { %v507_v63 = vmul.f32 %v420_v58, %v420_v58 }
  0xf1   : > { %v525_v16 = vadd.f32 %v524_v14, %v494_v12  ;;  %v454_v17 = vadd.f32 %v453_v13, %v390_v34  ;;  %v512_v13 = vmul.f32 %v433_v28, %v433_v28 }
  0xf3   : > { %v455_v20 = vadd.f32 %v454_v17, %v393_v39  ;;  %v526_v21 = vadd.f32 %v525_v16, %v495_v15  ;;  %v501_v39 = vmul.f32 %v841_v33, %v841_v33 }
  0xf5   : > { %v456_v23 = vadd.f32 %v455_v20, %v395_v53  ;;  %v527_v24 = vadd.f32 %v526_v21, %v496_v19  ;;  %v435_v51 = vpop.f32.mrf.mxu3 }
  0xf6   : > { %v513_v16 = vmul.f32 %v435_v51, %v435_v51 }
  0xf7   : > { %v457_v26 = vadd.f32 %v456_v23, %v398_v7  ;;  %v528_v29 = vadd.f32 %v527_v24, %v497_v22 }
  0xf9   : > { %v529_v32 = vadd.f32 %v528_v29, %v498_v27  ;;  %v458_v35 = vadd.f32 %v457_v26, %v400_v25 }
  0xfb   : > { %v459_v34 = vadd.f32 %v458_v35, %v839_v30  ;;  %v530_v41 = vadd.f32 %v529_v32, %v499_v38  ;;  %v443_v38 = vld [vmem:[%s891_s2] sm:$0x1] }
  0xfd   : > { %v460_v43 = vadd.f32 %v459_v34, %v841_v33  ;;  %v531_v44 = vadd.f32 %v530_v41, %v500_v31  ;;  %v438_v3 = vpop.f32.mrf.mxu3  ;;  %v483_v41 = vld [vmem:[%s892_s3] sm:$0x1] }
  0xff   : > { %v461_v47 = vadd.f32 %v460_v43, %v845_v37  ;;  %v532_v48 = vadd.f32 %v531_v44, %v501_v39 }
 0x101   : > { %v533_v50 = vadd.f32 %v532_v48, %v502_v46  ;;  %v462_v30 = vadd.f32 %v461_v47, %v849_v45 }
 0x103   : > { %v463_v53 = vadd.f32 %v462_v30, %v413_v0  ;;  %v534_v54 = vadd.f32 %v533_v50, %v503_v49  ;;  %v509_v0 = vmul.f32 %v847_v40, %v847_v40 }
 0x105   : > { %v464_v55 = vadd.f32 %v463_v53, %v415_v18  ;;  %v535_v33 = vadd.f32 %v534_v54, %v504_v52  ;;  %v440_v18 = vpop.f32.mrf.mxu3 }
 0x106   : > { %v515_v23 = vmul.f32 %v440_v18, %v440_v18 }
 0x107   : > { %v536_v59 = vadd.f32 %v535_v33, %v505_v56  ;;  %v465_v60 = vadd.f32 %v464_v55, %v418_v42 }
 0x109   : > { %v537_v62 = vadd.f32 %v536_v59, %v506_v61  ;;  %v466_v37 = vadd.f32 %v465_v60, %v420_v58 }
 0x10b   : > { %v467_v2 = vadd.f32 %v466_v37, %v843_v36  ;;  %v538_v45 = vadd.f32 %v537_v62, %v507_v63 }
 0x10d   : > { %v468_v4 = vadd.f32 %v467_v2, %v847_v40  ;;  %v539_v5 = vadd.f32 %v538_v45, %v508_v1  ;;  %v514_v40 = vmul.f32 %v438_v3, %v438_v3 }
 0x10f   : > { %v469_v7 = vadd.f32 %v468_v4, %v851_v57  ;;  %v540_v8 = vadd.f32 %v539_v5, %v509_v0 }
 0x111   : > { %v541_v10 = vadd.f32 %v540_v8, %v510_v6  ;;  %v470_v12 = vadd.f32 %v469_v7, %v430_v11 }
 0x113   : > { %v471_v14 = vadd.f32 %v470_v12, %v433_v28  ;;  %v542_v36 = vadd.f32 %v541_v10, %v511_v9 }
 0x115   : > { %v472_v15 = vadd.f32 %v471_v14, %v435_v51  ;;  %v543_v17 = vadd.f32 %v542_v36, %v512_v13 }
 0x117   : > { %v544_v19 = vadd.f32 %v543_v17, %v513_v16  ;;  %v473_v20 = vadd.f32 %v472_v15, %v438_v3 }
 0x119   : > { %v545_v21 = vadd.f32 %v544_v19, %v514_v40  ;;  %v474_v22 = vadd.f32 %v473_v20, %v440_v18 }
 0x11b   : > { %v475_v24 = vrot.slane %v474_v22, 4  ;;  %v546_v25 = vadd.f32 %v545_v21, %v515_v23 }
 0x11d   : > { %v476_v57 = vadd.f32 %v475_v24, %v474_v22  ;;  %v547_v26 = vrot.slane %v546_v25, 4 }
 0x11f   : > { %v477_v27 = vrot.slane %v476_v57, 2  ;;  %v548_v29 = vadd.f32 %v547_v26, %v546_v25 }
 0x121   : > { %v478_v11 = vadd.f32 %v477_v27, %v476_v57  ;;  %v549_v32 = vrot.slane %v548_v29, 2 }
 0x123   : > { %v479_v28 = vrot.slane %v478_v11, 1  ;;  %v550_v35 = vadd.f32 %v549_v32, %v548_v29 }
 0x125   : > { %v480_v31 = vadd.f32 %v479_v28, %v478_v11  ;;  %v551_v34 = vrot.slane %v550_v35, 1 }
 0x127   : > { %v481_v42 = vadd.f32 %v480_v31, %v443_v38  ;;  %v552_v39 = vadd.f32 %v551_v34, %v550_v35 }
 0x129   : > { %482 = vst [vmem:[%s891_s2] sm:$0x1] %v481_v42  ;;  %v553_v43 = vadd.f32 %v552_v39, %v483_v41 }
 0x12b   : > { %554 = vst [vmem:[%s892_s3] sm:$0x1] %v553_v43 }
 0x12c PF: > { %s14_s12 = sadd.s32 1, %s757_s12  }
 0x12d   : > { %p11_p5 = scmp.ge.s32.totalorder %s14_s12, 4  }
 0x12f   :  { %13 = sbr.rel (!%p11_p5) target bundleno = 1 (0x1), region = 66 }

</bundles_post_ra>
